<compile_context>
chip_gen: v6e
topology: v6e:2x2x1
jax: 0.10.0
libtpu: 0.0.40
codegen_flags: <defaults>
</compile_context>

<pallas_src>
import functools

import jax
import jax.numpy as jnp
from jax.experimental import pallas as pl
from jax.experimental.pallas import tpu as pltpu


LANE = 128


def _round_up(x, m):
    return (x + m - 1) // m * m


def _cdiv(a, b):
    return (a + b - 1) // b


def _fused_taylor_kan_kernel(*refs, num_layers, order):
    """refs = (x_ref, [w_1, ..., w_{order-1}, b] * num_layers, o_ref).

    x_ref : (tm, in_f0)            VMEM row tile (natural width, no column pad)
    w_k   : (k_dim_L, out_pad_L)   VMEM, grid-resident, already in matmul dtype
    b     : (1, out_pad_L)         VMEM, grid-resident f32 (k=0 term folded in)
    o_ref : (tm, out_pad_last)     VMEM row tile (lane-dense)
    """
    x_ref = refs[0]
    o_ref = refs[-1]
    param_refs = refs[1:-1]
    n_pow = max(order - 1, 0)
    tm = x_ref.shape[0]

    h = x_ref[...].astype(jnp.float32)
    idx = 0
    for _ in range(num_layers):
        w_refs = param_refs[idx:idx + n_pow]
        b_ref = param_refs[idx + n_pow]
        idx += n_pow + 1
        if n_pow > 0:
            # One MXU dot per power, accumulating in f32. Powers are cast to the
            # (host pre-cast) weight dtype as they are produced — no concat, no
            # staged copy of the whole stack.
            xp = h
            acc = jnp.dot(xp.astype(w_refs[0].dtype), w_refs[0][...],
                          preferred_element_type=jnp.float32)
            for k in range(1, n_pow):
                xp = xp * h
                acc = acc + jnp.dot(xp.astype(w_refs[k].dtype), w_refs[k][...],
                                    preferred_element_type=jnp.float32)
            h = acc + b_ref[...]
        else:
            # order == 1: only the constant (k = 0) term survives.
            h = jnp.broadcast_to(b_ref[...], (tm, b_ref.shape[-1])).astype(jnp.float32)
    o_ref[...] = h.astype(o_ref.dtype)


def init_multilayer_taylor_kan(key, layers_hidden, order, addbias=True):
    """Raw parameters matching the PyTorch TaylorKANLayer shapes."""
    params = []
    for in_f, out_f in zip(layers_hidden, layers_hidden[1:]):
        key, sub = jax.random.split(key)
        coeffs = jax.random.normal(sub, (out_f, in_f, order), jnp.float32) * 0.01
        bias = jnp.zeros((1, out_f), jnp.float32) if addbias else None
        params.append((coeffs, bias))
    return params


def prepare_taylor_params(params, *, order, addbias=True, mm_dtype=jnp.float32):
    """One-time host-side layout (hoisted out of the per-forward path).

    - Per-power MXU-RHS weights, pre-cast to mm_dtype (bf16 fast path on v6e/v7x).
    - The k = 0 (x^0 == 1) term is folded into an effective f32 bias.
    - K dim: natural in_f for layer 0 (so x needs no column pad), 128-aligned to
      the incoming activation width for deeper layers.
    - Output dim padded to a lane multiple for unmasked stores.
    """
    prepared, dims = [], []
    for li, (coeffs, bias) in enumerate(params):
        out_f, in_f, _ = coeffs.shape
        k_dim = in_f if li == 0 else _round_up(in_f, LANE)
        out_pad = _round_up(out_f, LANE)
        w_powers = []
        for k in range(1, order):
            wk = jnp.transpose(coeffs[:, :, k]).astype(jnp.float32)   # (in_f, out_f)
            wk = jnp.pad(wk, ((0, k_dim - in_f), (0, out_pad - out_f)))
            w_powers.append(wk.astype(mm_dtype))
        b_eff = jnp.sum(coeffs[:, :, 0], axis=1)[None, :]
        if addbias and bias is not None:
            b_eff = b_eff + bias
        b_eff = jnp.pad(b_eff.astype(jnp.float32), ((0, 0), (0, out_pad - out_f)))
        prepared.append((tuple(w_powers), b_eff))
        dims.append((in_f, out_f, k_dim, out_pad))
    return prepared, dims


def multilayer_taylor_kan_forward(x, prepared, dims, *, order, tm=512):
    """x: (..., in_dim). Runs the whole TaylorKAN stack in a single pallas_call."""
    lead_shape = x.shape[:-1]
    in_f0 = x.shape[-1]
    assert in_f0 == dims[0][0]
    h2d = x.reshape(-1, in_f0)
    n = h2d.shape[0]
    out_f_last, out_pad_last = dims[-1][1], dims[-1][3]
    num_layers = len(prepared)

    if order >= 2:
        w_dtype = prepared[0][0][0].dtype
    else:
        w_dtype = jnp.float32
    mm_itemsize = jnp.dtype(w_dtype).itemsize
    # bf16 packs two rows per sublane — keep row tiles 16-aligned on that path.
    row_align = 16 if jnp.dtype(w_dtype) == jnp.dtype(jnp.bfloat16) else 8
    x_itemsize = jnp.dtype(x.dtype).itemsize

    w_bytes = 0
    for w_powers, b in prepared:
        w_bytes += sum(int(w.size) * jnp.dtype(w.dtype).itemsize for w in w_powers)
        w_bytes += int(b.size) * 4

    def vmem_bytes(tm_):
        total = 2 * tm_ * in_f0 * x_itemsize            # input row tile (double buffered)
        total += 2 * tm_ * out_pad_last * x_itemsize    # output row tile (double buffered)
        total += 2 * w_bytes                            # resident params (worst case 2x)
        for (_, _, k_dim, out_pad) in dims:             # per-layer live temporaries
            total += tm_ * (k_dim * (2 * 4 + mm_itemsize) + out_pad * 4)
        return total

    # Generation-aware VMEM budget (v5e/v6e: 128 MiB, v7x: 64 MiB) with headroom
    # for compiler-internal scratch; conservative fallback if the query fails.
    try:
        vmem_cap = int(pltpu.get_tpu_info().vmem_capacity_bytes)
    except Exception:
        vmem_cap = 64 * 1024 * 1024
    vmem_budget = (vmem_cap * 7) // 8

    # Row tile: biggest that fits the budget; equalize tiles so row-padding waste
    # stays small; guarantee >=2 grid steps when possible (v7x has 2 TensorCores).
    tm_req = max(row_align, min(tm, _round_up(n, row_align)))
    tm_req = _round_up(tm_req, row_align)
    while tm_req > row_align and vmem_bytes(tm_req) > vmem_budget:
        tm_req = _round_up(max(tm_req // 2, row_align), row_align)
    ntiles = _cdiv(n, tm_req)
    if ntiles == 1 and n >= 2 * row_align:
        ntiles = 2
    tm_eff = _round_up(_cdiv(n, ntiles), row_align)
    n_pad = ntiles * tm_eff

    # Natural-width input (no 128-column pad of x); skip the row-pad copy when
    # the row count already divides evenly.
    if n_pad == n:
        x_in = h2d
    else:
        x_in = jnp.zeros((n_pad, in_f0), x.dtype).at[:n].set(h2d)

    kernel = functools.partial(_fused_taylor_kan_kernel,
                               num_layers=num_layers, order=order)
    vmem_limit = int(min(max(2 * vmem_bytes(tm_eff), 32 * 1024 * 1024), vmem_budget))

    def build_and_call(use_buffered):
        def resident_spec(shape):
            if use_buffered:
                # Constant index_map -> single-buffered resident block.
                return pl.BlockSpec(shape, lambda i: (0, 0),
                                    pipeline_mode=pl.Buffered(1))
            return pl.BlockSpec(shape, lambda i: (0, 0))

        in_specs = [pl.BlockSpec((tm_eff, in_f0), lambda i: (i, 0))]
        flat_inputs = [x_in]
        for w_powers, b in prepared:
            for w in w_powers:
                in_specs.append(resident_spec(w.shape))
                flat_inputs.append(w)
            in_specs.append(resident_spec(b.shape))
            flat_inputs.append(b)

        out = pl.pallas_call(
            kernel,
            out_shape=jax.ShapeDtypeStruct((n_pad, out_pad_last), x.dtype),
            grid_spec=pltpu.PrefetchScalarGridSpec(
                num_scalar_prefetch=0,
                grid=(ntiles,),
                in_specs=in_specs,
                out_specs=pl.BlockSpec((tm_eff, out_pad_last), lambda i: (i, 0)),
            ),
            compiler_params=pltpu.CompilerParams(
                dimension_semantics=("parallel",),
                vmem_limit_bytes=vmem_limit,
            ),
        )(*flat_inputs)
        return jax.block_until_ready(out)

    try:
        out = build_and_call(True)
    except Exception:
        # pipeline_mode=pl.Buffered(1) unsupported in this build: fall back to the
        # default double-buffered resident blocks (correct, slightly more VMEM).
        out = build_and_call(False)

    out = out[:n, :out_f_last]
    return out.reshape(lead_shape + (out_f_last,))


def reference_forward(x, params, *, order, addbias=True):
    """Pure-JAX reference mirroring the PyTorch TaylorKANLayer loop exactly."""
    lead_shape = x.shape[:-1]
    h = x.reshape(-1, x.shape[-1])
    for coeffs, bias in params:
        out_dim = coeffs.shape[0]
        y = jnp.zeros((h.shape[0], out_dim), jnp.float32)
        x_exp = h[:, None, :]  # (N, 1, in)
        for i in range(order):
            term = (x_exp ** i) * coeffs[None, :, :, i]  # (N, out, in)
            y = y + term.sum(axis=-1)
        if addbias and bias is not None:
            y = y + bias
        h = y
    return h.reshape(lead_shape + (h.shape[-1],))


if __name__ == "__main__":
    # TaylorKAN expert at small shapes: batch=2, seq=8 -> 16 rows,
    # hidden sizes [16, 32, 8], order=3.
    layers_hidden = [16, 32, 8]
    order = 3
    batch, seq = 2, 8

    key = jax.random.PRNGKey(0)
    key, kx = jax.random.split(key)
    x = jax.random.normal(kx, (batch, seq, layers_hidden[0]), dtype=jnp.float32)

    params = init_multilayer_taylor_kan(key, layers_hidden, order, addbias=True)
    ref = reference_forward(x, params, order=order, addbias=True)

    # f32 matmul path: tight correctness check.
    prep_f32, dims_f32 = prepare_taylor_params(params, order=order, addbias=True,
                                               mm_dtype=jnp.float32)
    out = multilayer_taylor_kan_forward(x, prep_f32, dims_f32, order=order, tm=512)
    out = jax.block_until_ready(out)
    assert out.shape == (batch, seq, layers_hidden[-1]), out.shape
    assert jnp.allclose(out, ref, atol=1e-4, rtol=1e-4), "f32 mismatch vs reference"

    # bf16 MXU fast path (v6e/v7x sweet spot; f32 accumulation): loose tolerance.
    prep_bf16, dims_bf16 = prepare_taylor_params(params, order=order, addbias=True,
                                                 mm_dtype=jnp.bfloat16)
    out_bf16 = multilayer_taylor_kan_forward(x, prep_bf16, dims_bf16, order=order, tm=512)
    out_bf16 = jax.block_until_ready(out_bf16)
    assert out_bf16.shape == (batch, seq, layers_hidden[-1]), out_bf16.shape
    assert jnp.allclose(out_bf16, ref, atol=5e-2, rtol=5e-2), "bf16 mismatch vs reference"

    print("KERNEL_OK")
</pallas_src>

<mosaic_0001>
module attributes {stable_mosaic.version = 11 : i64} {
  func.func @_fused_taylor_kan_kernel(%arg0: i32, %arg1: memref<8x16xf32, #tpu.memory_space<vmem>>, %arg2: memref<16x128xf32, #tpu.memory_space<vmem>>, %arg3: memref<16x128xf32, #tpu.memory_space<vmem>>, %arg4: memref<1x128xf32, #tpu.memory_space<vmem>>, %arg5: memref<128x128xf32, #tpu.memory_space<vmem>>, %arg6: memref<128x128xf32, #tpu.memory_space<vmem>>, %arg7: memref<1x128xf32, #tpu.memory_space<vmem>>, %arg8: memref<8x128xf32, #tpu.memory_space<vmem>>) attributes {dimension_semantics = [#tpu.dimension_semantics<parallel>], iteration_bounds = array<i64: 2>, scalar_prefetch = 0 : i64, scratch_operands = 0 : i64, tpu.core_type = #tpu.core_type<tc>, window_params = [{transform_indices = @transform_0, window_bounds = array<i64: 8, 16>}, {pipeline_mode = #tpu.pipeline_mode<synchronous>, transform_indices = @transform_1, window_bounds = array<i64: 16, 128>}, {pipeline_mode = #tpu.pipeline_mode<synchronous>, transform_indices = @transform_2, window_bounds = array<i64: 16, 128>}, {pipeline_mode = #tpu.pipeline_mode<synchronous>, transform_indices = @transform_3, window_bounds = array<i64: 1, 128>}, {pipeline_mode = #tpu.pipeline_mode<synchronous>, transform_indices = @transform_4, window_bounds = array<i64: 128, 128>}, {pipeline_mode = #tpu.pipeline_mode<synchronous>, transform_indices = @transform_5, window_bounds = array<i64: 128, 128>}, {pipeline_mode = #tpu.pipeline_mode<synchronous>, transform_indices = @transform_6, window_bounds = array<i64: 1, 128>}, {transform_indices = @transform_7, window_bounds = array<i64: 8, 128>}]} {
    %c0 = arith.constant 0 : index
    %c0_0 = arith.constant 0 : index
    %0 = vector.load %arg1[%c0, %c0_0] : memref<8x16xf32, #tpu.memory_space<vmem>>, vector<8x16xf32>
    %c0_1 = arith.constant 0 : index
    %c0_2 = arith.constant 0 : index
    %1 = vector.load %arg2[%c0_1, %c0_2] : memref<16x128xf32, #tpu.memory_space<vmem>>, vector<16x128xf32>
    %cst = arith.constant dense<0.000000e+00> : vector<8x128xf32>
    %2 = tpu.matmul %0, %1, %cst {dimension_numbers = #tpu.dot_dimension_numbers<[1], [0], [0], [1], [0, 0, 1, 1], [], []>} : vector<8x16xf32>, vector<16x128xf32>, vector<8x128xf32> -> vector<8x128xf32>
    %3 = arith.mulf %0, %0 : vector<8x16xf32>
    %c0_3 = arith.constant 0 : index
    %c0_4 = arith.constant 0 : index
    %4 = vector.load %arg3[%c0_3, %c0_4] : memref<16x128xf32, #tpu.memory_space<vmem>>, vector<16x128xf32>
    %cst_5 = arith.constant dense<0.000000e+00> : vector<8x128xf32>
    %5 = tpu.matmul %3, %4, %cst_5 {dimension_numbers = #tpu.dot_dimension_numbers<[1], [0], [0], [1], [0, 0, 1, 1], [], []>} : vector<8x16xf32>, vector<16x128xf32>, vector<8x128xf32> -> vector<8x128xf32>
    %6 = arith.addf %2, %5 : vector<8x128xf32>
    %c0_6 = arith.constant 0 : index
    %c0_7 = arith.constant 0 : index
    %7 = vector.load %arg4[%c0_6, %c0_7] : memref<1x128xf32, #tpu.memory_space<vmem>>, vector<1x128xf32>
    %8 = vector.broadcast %7 : vector<1x128xf32> to vector<8x128xf32>
    %9 = arith.addf %6, %8 : vector<8x128xf32>
    %c0_8 = arith.constant 0 : index
    %c0_9 = arith.constant 0 : index
    %10 = vector.load %arg5[%c0_8, %c0_9] : memref<128x128xf32, #tpu.memory_space<vmem>>, vector<128x128xf32>
    %cst_10 = arith.constant dense<0.000000e+00> : vector<8x128xf32>
    %11 = tpu.matmul %9, %10, %cst_10 {dimension_numbers = #tpu.dot_dimension_numbers<[1], [0], [0], [1], [0, 0, 1, 1], [], []>} : vector<8x128xf32>, vector<128x128xf32>, vector<8x128xf32> -> vector<8x128xf32>
    %12 = arith.mulf %9, %9 : vector<8x128xf32>
    %c0_11 = arith.constant 0 : index
    %c0_12 = arith.constant 0 : index
    %13 = vector.load %arg6[%c0_11, %c0_12] : memref<128x128xf32, #tpu.memory_space<vmem>>, vector<128x128xf32>
    %cst_13 = arith.constant dense<0.000000e+00> : vector<8x128xf32>
    %14 = tpu.matmul %12, %13, %cst_13 {dimension_numbers = #tpu.dot_dimension_numbers<[1], [0], [0], [1], [0, 0, 1, 1], [], []>} : vector<8x128xf32>, vector<128x128xf32>, vector<8x128xf32> -> vector<8x128xf32>
    %15 = arith.addf %11, %14 : vector<8x128xf32>
    %c0_14 = arith.constant 0 : index
    %c0_15 = arith.constant 0 : index
    %16 = vector.load %arg7[%c0_14, %c0_15] : memref<1x128xf32, #tpu.memory_space<vmem>>, vector<1x128xf32>
    %17 = vector.broadcast %16 : vector<1x128xf32> to vector<8x128xf32>
    %18 = arith.addf %15, %17 : vector<8x128xf32>
    %c0_16 = arith.constant 0 : index
    %c0_17 = arith.constant 0 : index
    %19 = vector.load %arg8[%c0_16, %c0_17] : memref<8x128xf32, #tpu.memory_space<vmem>>, vector<8x128xf32>
    tpu.vector_store %arg8[%c0_16, %c0_17], %18 {strides = array<i32>} : memref<8x128xf32, #tpu.memory_space<vmem>>, vector<8x128xf32>,
    return
  }
  func.func @transform_0(%arg0: i32) -> (i32, i32) {
    %c0_i32 = arith.constant 0 : i32
    %c0_i32_0 = arith.constant 0 : i32
    return %arg0, %c0_i32 : i32, i32
  }
  func.func @transform_1(%arg0: i32) -> (i32, i32) {
    %c0_i32 = arith.constant 0 : i32
    %c0_i32_0 = arith.constant 0 : i32
    %c0_i32_1 = arith.constant 0 : i32
    return %c0_i32, %c0_i32_0 : i32, i32
  }
  func.func @transform_2(%arg0: i32) -> (i32, i32) {
    %c0_i32 = arith.constant 0 : i32
    %c0_i32_0 = arith.constant 0 : i32
    %c0_i32_1 = arith.constant 0 : i32
    return %c0_i32, %c0_i32_0 : i32, i32
  }
  func.func @transform_3(%arg0: i32) -> (i32, i32) {
    %c0_i32 = arith.constant 0 : i32
    %c0_i32_0 = arith.constant 0 : i32
    %c0_i32_1 = arith.constant 0 : i32
    return %c0_i32, %c0_i32_0 : i32, i32
  }
  func.func @transform_4(%arg0: i32) -> (i32, i32) {
    %c0_i32 = arith.constant 0 : i32
    %c0_i32_0 = arith.constant 0 : i32
    %c0_i32_1 = arith.constant 0 : i32
    return %c0_i32, %c0_i32_0 : i32, i32
  }
  func.func @transform_5(%arg0: i32) -> (i32, i32) {
    %c0_i32 = arith.constant 0 : i32
    %c0_i32_0 = arith.constant 0 : i32
    %c0_i32_1 = arith.constant 0 : i32
    return %c0_i32, %c0_i32_0 : i32, i32
  }
  func.func @transform_6(%arg0: i32) -> (i32, i32) {
    %c0_i32 = arith.constant 0 : i32
    %c0_i32_0 = arith.constant 0 : i32
    %c0_i32_1 = arith.constant 0 : i32
    return %c0_i32, %c0_i32_0 : i32, i32
  }
  func.func @transform_7(%arg0: i32) -> (i32, i32) {
    %c0_i32 = arith.constant 0 : i32
    %c0_i32_0 = arith.constant 0 : i32
    return %arg0, %c0_i32 : i32, i32
  }
}

module attributes {stable_mosaic.version = 11 : i64} {
  func.func @_fused_taylor_kan_kernel(%arg0: i32, %arg1: memref<8x16xf32, #tpu.memory_space<vmem>>, %arg2: memref<16x128xf32, #tpu.memory_space<vmem>>, %arg3: memref<16x128xf32, #tpu.memory_space<vmem>>, %arg4: memref<1x128xf32, #tpu.memory_space<vmem>>, %arg5: memref<128x128xf32, #tpu.memory_space<vmem>>, %arg6: memref<128x128xf32, #tpu.memory_space<vmem>>, %arg7: memref<1x128xf32, #tpu.memory_space<vmem>>, %arg8: memref<8x128xf32, #tpu.memory_space<vmem>>) attributes {dimension_semantics = [#tpu.dimension_semantics<parallel>], iteration_bounds = array<i64: 2>, scalar_prefetch = 0 : i64, scratch_operands = 0 : i64, tpu.core_type = #tpu.core_type<tc>, window_params = [{transform_indices = @transform_0, window_bounds = array<i64: 8, 16>}, {pipeline_mode = #tpu.pipeline_mode<synchronous>, transform_indices = @transform_1, window_bounds = array<i64: 16, 128>}, {pipeline_mode = #tpu.pipeline_mode<synchronous>, transform_indices = @transform_2, window_bounds = array<i64: 16, 128>}, {pipeline_mode = #tpu.pipeline_mode<synchronous>, transform_indices = @transform_3, window_bounds = array<i64: 1, 128>}, {pipeline_mode = #tpu.pipeline_mode<synchronous>, transform_indices = @transform_4, window_bounds = array<i64: 128, 128>}, {pipeline_mode = #tpu.pipeline_mode<synchronous>, transform_indices = @transform_5, window_bounds = array<i64: 128, 128>}, {pipeline_mode = #tpu.pipeline_mode<synchronous>, transform_indices = @transform_6, window_bounds = array<i64: 1, 128>}, {transform_indices = @transform_7, window_bounds = array<i64: 8, 128>}]} {
    %c0 = arith.constant 0 : index
    %c0_0 = arith.constant 0 : index
    %0 = vector.load %arg1[%c0, %c0_0] : memref<8x16xf32, #tpu.memory_space<vmem>>, vector<8x16xf32>
    %c0_1 = arith.constant 0 : index
    %c0_2 = arith.constant 0 : index
    %1 = vector.load %arg2[%c0_1, %c0_2] : memref<16x128xf32, #tpu.memory_space<vmem>>, vector<16x128xf32>
    %cst = arith.constant dense<0.000000e+00> : vector<8x128xf32>
    %2 = tpu.matmul %0, %1, %cst {dimension_numbers = #tpu.dot_dimension_numbers<[1], [0], [0], [1], [0, 0, 1, 1], [], []>} : vector<8x16xf32>, vector<16x128xf32>, vector<8x128xf32> -> vector<8x128xf32>
    %3 = arith.mulf %0, %0 : vector<8x16xf32>
    %c0_3 = arith.constant 0 : index
    %c0_4 = arith.constant 0 : index
    %4 = vector.load %arg3[%c0_3, %c0_4] : memref<16x128xf32, #tpu.memory_space<vmem>>, vector<16x128xf32>
    %cst_5 = arith.constant dense<0.000000e+00> : vector<8x128xf32>
    %5 = tpu.matmul %3, %4, %cst_5 {dimension_numbers = #tpu.dot_dimension_numbers<[1], [0], [0], [1], [0, 0, 1, 1], [], []>} : vector<8x16xf32>, vector<16x128xf32>, vector<8x128xf32> -> vector<8x128xf32>
    %6 = arith.addf %2, %5 : vector<8x128xf32>
    %c0_6 = arith.constant 0 : index
    %c0_7 = arith.constant 0 : index
    %7 = vector.load %arg4[%c0_6, %c0_7] : memref<1x128xf32, #tpu.memory_space<vmem>>, vector<1x128xf32>
    %8 = vector.broadcast %7 : vector<1x128xf32> to vector<8x128xf32>
    %9 = arith.addf %6, %8 : vector<8x128xf32>
    %c0_8 = arith.constant 0 : index
    %c0_9 = arith.constant 0 : index
    %10 = vector.load %arg5[%c0_8, %c0_9] : memref<128x128xf32, #tpu.memory_space<vmem>>, vector<128x128xf32>
    %cst_10 = arith.constant dense<0.000000e+00> : vector<8x128xf32>
    %11 = tpu.matmul %9, %10, %cst_10 {dimension_numbers = #tpu.dot_dimension_numbers<[1], [0], [0], [1], [0, 0, 1, 1], [], []>} : vector<8x128xf32>, vector<128x128xf32>, vector<8x128xf32> -> vector<8x128xf32>
    %12 = arith.mulf %9, %9 : vector<8x128xf32>
    %c0_11 = arith.constant 0 : index
    %c0_12 = arith.constant 0 : index
    %13 = vector.load %arg6[%c0_11, %c0_12] : memref<128x128xf32, #tpu.memory_space<vmem>>, vector<128x128xf32>
    %cst_13 = arith.constant dense<0.000000e+00> : vector<8x128xf32>
    %14 = tpu.matmul %12, %13, %cst_13 {dimension_numbers = #tpu.dot_dimension_numbers<[1], [0], [0], [1], [0, 0, 1, 1], [], []>} : vector<8x128xf32>, vector<128x128xf32>, vector<8x128xf32> -> vector<8x128xf32>
    %15 = arith.addf %11, %14 : vector<8x128xf32>
    %c0_14 = arith.constant 0 : index
    %c0_15 = arith.constant 0 : index
    %16 = vector.load %arg7[%c0_14, %c0_15] : memref<1x128xf32, #tpu.memory_space<vmem>>, vector<1x128xf32>
    %17 = vector.broadcast %16 : vector<1x128xf32> to vector<8x128xf32>
    %18 = arith.addf %15, %17 : vector<8x128xf32>
    %c0_16 = arith.constant 0 : index
    %c0_17 = arith.constant 0 : index
    %19 = vector.load %arg8[%c0_16, %c0_17] : memref<8x128xf32, #tpu.memory_space<vmem>>, vector<8x128xf32>
    tpu.vector_store %arg8[%c0_16, %c0_17], %18 {strides = array<i32>} : memref<8x128xf32, #tpu.memory_space<vmem>>, vector<8x128xf32>,
    return
  }
  func.func @transform_0(%arg0: i32) -> (i32, i32) {
    %c0_i32 = arith.constant 0 : i32
    %c0_i32_0 = arith.constant 0 : i32
    return %arg0, %c0_i32 : i32, i32
  }
  func.func @transform_1(%arg0: i32) -> (i32, i32) {
    %c0_i32 = arith.constant 0 : i32
    %c0_i32_0 = arith.constant 0 : i32
    %c0_i32_1 = arith.constant 0 : i32
    return %c0_i32, %c0_i32_0 : i32, i32
  }
  func.func @transform_2(%arg0: i32) -> (i32, i32) {
    %c0_i32 = arith.constant 0 : i32
    %c0_i32_0 = arith.constant 0 : i32
    %c0_i32_1 = arith.constant 0 : i32
    return %c0_i32, %c0_i32_0 : i32, i32
  }
  func.func @transform_3(%arg0: i32) -> (i32, i32) {
    %c0_i32 = arith.constant 0 : i32
    %c0_i32_0 = arith.constant 0 : i32
    %c0_i32_1 = arith.constant 0 : i32
    return %c0_i32, %c0_i32_0 : i32, i32
  }
  func.func @transform_4(%arg0: i32) -> (i32, i32) {
    %c0_i32 = arith.constant 0 : i32
    %c0_i32_0 = arith.constant 0 : i32
    %c0_i32_1 = arith.constant 0 : i32
    return %c0_i32, %c0_i32_0 : i32, i32
  }
  func.func @transform_5(%arg0: i32) -> (i32, i32) {
    %c0_i32 = arith.constant 0 : i32
    %c0_i32_0 = arith.constant 0 : i32
    %c0_i32_1 = arith.constant 0 : i32
    return %c0_i32, %c0_i32_0 : i32, i32
  }
  func.func @transform_6(%arg0: i32) -> (i32, i32) {
    %c0_i32 = arith.constant 0 : i32
    %c0_i32_0 = arith.constant 0 : i32
    %c0_i32_1 = arith.constant 0 : i32
    return %c0_i32, %c0_i32_0 : i32, i32
  }
  func.func @transform_7(%arg0: i32) -> (i32, i32) {
    %c0_i32 = arith.constant 0 : i32
    %c0_i32_0 = arith.constant 0 : i32
    return %arg0, %c0_i32 : i32, i32
  }
}

</mosaic_0001>

<bundles_post_ra>
// kernel: tpu_custom_call.1
= control target key start
LH: loop header
LB: loop body
LE: loop exit
PB: predicated region body
PF: predicated region fallthrough
CT: control target
= control target key end

     0   :  { %s1581_s0 = inlined_call_operand.hbm [shape: f32[16,16], index: 0, kind: input, shape index: {}]   ;;  %s1582_s1 = inlined_call_operand.hbm [shape: f32[16,128], index: 1, kind: input, shape index: {}]   ;;  %s1583_s2 = inlined_call_operand.hbm [shape: f32[16,128], index: 2, kind: input, shape index: {}]   ;;  %s1584_s3 = inlined_call_operand.vmem [shape: f32[1,128], index: 3, kind: input, shape index: {}]   ;;  %s1585_s4 = inlined_call_operand.hbm [shape: f32[128,128], index: 4, kind: input, shape index: {}]   ;;  %s1586_s5 = inlined_call_operand.hbm [shape: f32[128,128], index: 5, kind: input, shape index: {}]   ;;  %s1587_s6 = inlined_call_operand.vmem [shape: f32[1,128], index: 6, kind: input, shape index: {}]   ;;  %s1588_s7 = inlined_call_operand.hbm [shape: f32[16,128], index: 7, kind: output, shape index: {}]  }
   0x1   :  { %1593 = sst [smem:[#allocation16_spill]] %s1582_s1 }
   0x2   :  { %1594 = sst [smem:[#allocation17_spill]] %s1583_s2 }
   0x3   :  { %12 = vsyncpa [#allocation3], 0 }
   0x4   :  { %14 = vsyncpa [#allocation3 + $0x1], 0 }
   0x5   :  { %15 = vsyncpa [#allocation6], 0 }
   0x6   :  { %16 = vsyncpa [#allocation9], 0 }
   0x7   :  { %17 = vsyncpa [#allocation4], 0 }
   0x8   :  { %19 = vsyncpa [#allocation4 + $0x1], 0  ;;  %s1312_s24 = smov 0   ;;  %s1314_s25 = smov 0  }
   0x9   :  { %s1316_s26 = smov 0   ;;  %s1318_s27 = smov 0  }
   0xa LB: > { %s1262_s28 = smov [#allocation5]   ;;  %s1333_s30 = sadd.s32 4294967295, %s1260_s27   ;;  %s1260_s27 = sphi %s1318_s27, %s1616_s27   ;;  %s1256_s26 = sphi %s1316_s26, %s1615_s26   ;;  %s1252_s25 = sphi %s1314_s25, %s1614_s25   ;;  %s1248_s24 = sphi %s1312_s24, %s1613_s24  }
   0xb   : > { %s220_s29 = sshll.u32 %s1262_s28, 4  ;;  %p818_p0 = scmp.ge.s32.totalorder %s1260_s27, 1  ;;  %s221_s29 = int_to_ptr.vmem [resolvable:$true] %s220_s29 }
   0xc   : > { %p1589_p1 = scmp.eq.s32.totalorder %s1333_s30, 0  ;;  %p208_p2 = scmp.lt.s32.totalorder %s1260_s27, 3 }
   0xd   : > { %s1263_s9 = smov [#allocation8]   ;;  %s1264_s12 = smov [#allocation7]  }
   0xe   : > { %p1338_p3 = pnand %p818_p0, %p208_p2  ;;  %s249_s10 = sshll.u32 %s1263_s9, 4  ;;  %s1351_s10 = int_to_ptr.vmem [resolvable:$true] %s249_s10 }
   0xf   : > { %s233_s13 = sshll.u32 %s1264_s12, 4  ;;  %s1067_s14 = scalar_lea.vmem %s221_s29, 256  ;;  %s1353_s13 = int_to_ptr.vmem [resolvable:$true] %s233_s13 }
  0x10   : > { %s1595_s8 = scalar_select %p1338_p3, 1, 0 }
  0x11   : > { %p985_p5 = pneg %p1338_p3  ;;  %p1068_p8 = scmp.ne.s32.totalorder %s221_s29, %s1067_s14 }
  0x12   : > { %p1075_p11 = scmp.lt.s32.totalorder %s221_s29, %s221_s29  ;;  %p1076_p12 = scmp.lt.s32.totalorder %s1067_s14, %s1067_s14 }
  0x13   : > { %p1347_p6 = pnand %p985_p5, %p1589_p1 }
  0x14   : > { %p1077_p13 = por %p1076_p12, %p1075_p11 }
  0x15   : > { %p1058_p7 = pneg %p1347_p6 }
  0x17   : > { %p1070_p9 = pnand %p1068_p8, %p1058_p7 }
  0x19   : > { %p1071_p10 = pneg %p1070_p9 }
  0x1b   : > { %p1078_p0 = pnand %p1077_p13, %p1071_p10 }
  0x1d   : > { %1081 = shalt.err (!%p1078_p0)
}
  0x1e   : > { %s1265_s15 = smov 128   ;;  %s1266_s16 = smov 8  }
  0x1f   : > { %s1597_s1 = sld [smem:[#allocation16_spill]]  ;;  %s1093_s19 = scalar_lea.vmem %s1351_s10, 2048 }
  0x20   : > { %p1094_p2 = scmp.ne.s32.totalorder %s1351_s10, %s1093_s19  ;;  %p1101_p9 = scmp.lt.s32.totalorder %s1351_s10, %s1351_s10 }
  0x21   : > { %p1102_p10 = scmp.lt.s32.totalorder %s1093_s19, %s1093_s19 }
  0x22   : > { %p1096_p5 = pnand %p1094_p2, %p1058_p7 }
  0x23   : > { %p1103_p11 = por %p1102_p10, %p1101_p9 }
  0x24   : > { %p1097_p8 = pneg %p1096_p5 }
  0x25   : > { %988 = dma.hbm_to_vmem [thread:$0]  (!%p1347_p6), %s1597_s1, 256, %s221_s29, [#allocation6], %s1265_s15, %s1265_s15, %s1266_s16  }
  0x26   : > { %p1104_p12 = pnand %p1103_p11, %p1097_p8 }
  0x28   : > { %1107 = shalt.err (!%p1104_p12)
}
  0x29   : > { %994 = dma.hbm_to_vmem [thread:$0]  (!%p1347_p6), %s1585_s4, 2048, %s1351_s10, [#allocation9], %s1265_s15, %s1265_s15, %s1266_s16  }
  0x2a   : > { %s1119_s22 = scalar_lea.vmem %s1353_s13, 256  ;;  %p1127_p5 = scmp.lt.s32.totalorder %s1353_s13, %s1353_s13 }
  0x2b   : > { %p1120_p13 = scmp.ne.s32.totalorder %s1353_s13, %s1119_s22  ;;  %p1128_p8 = scmp.lt.s32.totalorder %s1119_s22, %s1119_s22 }
  0x2d   : > { %p1122_p0 = pnand %p1120_p13, %p1058_p7  ;;  %p1129_p9 = por %p1128_p8, %p1127_p5 }
  0x2f   : > { %p1123_p2 = pneg %p1122_p0 }
  0x31   : > { %p1130_p10 = pnand %p1129_p9, %p1123_p2 }
  0x33   : > { %1133 = shalt.err (!%p1130_p10)
}
  0x34   : > { %s1598_s2 = sld [smem:[#allocation17_spill]]  ;;  %s1267_s29 = smov [#allocation10]  }
  0x35   : > { %s262_s9 = sshll.u32 %s1267_s29, 4  ;;  %s263_s9 = int_to_ptr.vmem [resolvable:$true] %s262_s9 }
  0x36   : > { %s1145_s10 = scalar_lea.vmem %s263_s9, 2048  ;;  %p1153_p0 = scmp.lt.s32.totalorder %s263_s9, %s263_s9 }
  0x37   : > { %p1146_p11 = scmp.ne.s32.totalorder %s263_s9, %s1145_s10  ;;  %p1154_p2 = scmp.lt.s32.totalorder %s1145_s10, %s1145_s10 }
  0x39   : > { %p1148_p12 = pnand %p1146_p11, %p1058_p7  ;;  %p1155_p5 = por %p1154_p2, %p1153_p0 }
  0x3a   : > { %991 = dma.hbm_to_vmem [thread:$0]  (!%p1347_p6), %s1598_s2, 256, %s1353_s13, [#allocation6], %s1265_s15, %s1265_s15, %s1266_s16  }
  0x3b   : > { %p1149_p13 = pneg %p1148_p12 }
  0x3d   : > { %p1156_p8 = pnand %p1155_p5, %p1149_p13 }
  0x3f   : > { %1159 = shalt.err (!%p1156_p8)
}
  0x40   : > { %997 = dma.hbm_to_vmem [thread:$0]  (!%p1347_p6), %s1586_s5, 2048, %s263_s9, [#allocation9], %s1265_s15, %s1265_s15, %s1266_s16  }
  0x41   : > { %s817_s11 = sadd.s32 4294967294, %s1260_s27   ;;  %s1413_s14 = sadd.s32 1, %s1260_s27  }
  0x42   : > { %s29_s17 = ssub.s32 %s1260_s27, %s1413_s14  ;;  %s32_s18 = sadd.s32 1, %s1256_s26 }
  0x43   : > { %p30_p7 = scmp.eq.s32.totalorder %s29_s17, 0  ;;  %p39_p9 = scmp.ne.s32.totalorder %s1256_s26, %s1252_s25 }
  0x44   : > { %p40_p10 = scmp.eq.s32.totalorder %s1260_s27, 0  ;;  %p45_p11 = scmp.ne.s32.totalorder %s1252_s25, %s1248_s24 }
  0x45   : > { %s1424_s19 = scalar_select %p30_p7, %s1256_s26, %s32_s18  }
  0x46   : > { %p1426_p12 = por %p40_p10, %p39_p9  ;;  %p1432_p6 = por %p1589_p1, %p45_p11 }
  0x47   : > { %p195_p13 = scmp.eq.s32.totalorder %s1333_s30, 1  ;;  %p201_p0 = scmp.eq.s32.totalorder %s817_s11, 1 }
  0x48   : > { %s1600_s15 = scalar_select %p1432_p6, 1, 0 }
  0x49   : > { %p1010_p2 = scmp.lt.s32.totalorder %s1260_s27, 2  ;;  %s279_s16 = sand.u32 1, %s1256_s26  }
  0x4a   : > { %p1439_p5 = por %p195_p13, %p39_p9  ;;  %p1443_p8 = por %p201_p0, %p45_p11 }
  0x4b   : > { %s824_s23 = sshll.u32 %s279_s16, 3  ;;  %s825_s28 = sshll.u32 %s1260_s27, 7 }
  0x4c   : > { %s1601_s21 = scalar_select %p1439_p5, 1, 0 }
  0x4d   : > { %s1602_s22 = scalar_select %p1443_p8, 1, 0 }
  0x4e   : > { %s1451_s10 = scalar_lea.hbm %s1581_s0, %s825_s28  ;;  %s283_s12 = scalar_lea.vmem [#allocation2], %s824_s23 }
  0x4f   : > { %s290_s13 = sshll.u32 %s283_s12, 4  ;;  %p1455_p7 = pnand %p1010_p2, %p1426_p12  ;;  %s291_s13 = int_to_ptr.vmem [resolvable:$true] %s290_s13 }
  0x50   : > { %s280_s17 = scalar_lea.sflag [#allocation3], %s279_s16  ;;  %s1160_s18 = scalar_lea.hbm %s1451_s10, 128 }
  0x51   : > { %p1161_p9 = scmp.ne.s32.totalorder %s1451_s10, %s1160_s18  ;;  %p1162_p10 = pneg %p1455_p7 }
  0x52   : > { %s1165_s9 = scalar_lea.hbm %s1581_s0, 256  ;;  %p1166_p0 = scmp.lt.s32.totalorder %s1451_s10, %s1581_s0 }
  0x53   : > { %p1163_p11 = pnand %p1162_p10, %p1161_p9  ;;  %p1167_p12 = scmp.lt.s32.totalorder %s1165_s9, %s1160_s18 }
  0x55   : > { %p1164_p13 = pneg %p1163_p11  ;;  %p1168_p2 = por %p1167_p12, %p1166_p0 }
  0x57   : > { %p1169_p4 = pnand %p1168_p2, %p1164_p13 }
  0x59   : > { %1172 = shalt.err (!%p1169_p4)
}
  0x5a   : > { %s1173_s20 = scalar_lea.vmem %s291_s13, 128  ;;  %s1268_s16 = smov [#allocation2]  }
  0x5b   : > { %p1174_p1 = scmp.ne.s32.totalorder %s291_s13, %s1173_s20  ;;  %s1178_s1 = sshll.u32 %s1268_s16, 4  ;;  %s1179_s1 = int_to_ptr.vmem [resolvable:$false] %s1178_s1 }
  0x5c   : > { %s1180_s2 = scalar_lea.vmem %s1179_s1, 256  ;;  %p1181_p9 = scmp.lt.s32.totalorder %s291_s13, %s1179_s1 }
  0x5d   : > { %p1176_p8 = pnand %p1174_p1, %p1162_p10  ;;  %p1182_p11 = scmp.lt.s32.totalorder %s1180_s2, %s1173_s20 }
  0x5f   : > { %p1177_p5 = pneg %p1176_p8  ;;  %p1183_p6 = por %p1182_p11, %p1181_p9 }
  0x61   : > { %p1184_p3 = pnand %p1183_p6, %p1177_p5 }
  0x63   : > { %1187 = shalt.err (!%p1184_p3)
}
  0x64   : > { %1001 = dma.hbm_to_vmem [thread:$0]  (!%p1455_p7), %s1451_s10, 128, %s291_s13, %s280_s17  }
  0x65   : > { %p1604_p13 = scmp.ne.s32.totalorder %s1595_s8, 0 }
  0x66   : > { %s1476_s18 = sand.u32 (!%p1604_p13), 1, %s1252_s25   ;;  %p1605_p1 = scmp.ne.s32.totalorder (!%p1604_p13), %s1600_s15, 0 }
  0x67   : > { %299 = sbr.rel (%p1604_p13) target bundleno = 530 (0x212), region = 48  ;;  %s827_s28 = sshll.u32 (!%p1604_p13), %s1476_s18, 3 }
  0x68   : > { %s302_s1 = scalar_lea.sflag (!%p1604_p13), [#allocation3], %s1476_s18  ;;  %s305_s2 = scalar_lea.vmem (!%p1604_p13), [#allocation2], %s827_s28 }
  0x6c   : > { %1231 = dma.done.wait (%p1605_p1), %s302_s1, 128  }
  0x6d   : > { %1233 = vsyncadd (%p1605_p1), %s302_s1, 4294967168  ;;  %p1606_p3 = scmp.eq.s32.totalorder %s1333_s30, 0 }
  0x6f   : > { %1235 = dma.done.wait (%p1606_p3), [#allocation6], 512   ;;  %p1607_p4 = pmov %p1606_p3 }
  0x70   : > { %p1608_p6 = pmov %p1606_p3 }
  0x71   : > { %1237 = vsyncadd (%p1607_p4), [#allocation6], 4294966784 }
  0x72   : > { %1239 = dma.done.wait (%p1608_p6), [#allocation9], 4096   ;;  %p1609_p5 = pmov %p1606_p3 }
  0x73   : > { %v1269_v0 = vmov 0.0   ;;  %vm1270_vm0 = vmmov 0   ;;  %v357_v1 = vld [vmem:[#allocation7 + $0x8] sm:$0xff]  ;;  %v354_v2 = vld [vmem:[#allocation5 + $0x8] sm:$0xff]  ;;  %v356_v3 = vld [vmem:[#allocation7] sm:$0xff]  ;;  %vm358_vm1 = vcmask 130048  }
  0x74   : > { %1241 = vsyncadd (%p1609_p5), [#allocation9], 4294963200  ;;  %881 = vmatprep.subr.mxu0 %v1269_v0  ;;  %888 = vmatprep.subr.mxu1 %v1269_v0  ;;  %v353_v4 = vld [vmem:[#allocation5] sm:$0xff]  ;;  %v352_v5 = vld [vmem:[%s305_s2] sm:$0xff]  ;;  %s838_s11 = sshll.u32 %s1333_s30, 7  ;;  %s351_s17 = scalar_lea.vmem [#allocation11], %s827_s28 }
  0x75   : > { %885 = vmatprep.mubr.msk.f32.mxu0 %vm1270_vm0, %v1269_v0  ;;  %892 = vmatprep.mubr.msk.f32.mxu1 %vm1270_vm0, %v1269_v0  ;;  %v355_v6 = vmul.f32 %v352_v5, %v352_v5  ;;  %v528_v7 = vld [vmem:[#allocation8 + $0x78] sm:$0xff]  ;;  %v527_v9 = vld [vmem:[#allocation8 + $0x70] sm:$0xff]  ;;  %v526_v11 = vld [vmem:[#allocation8 + $0x68] sm:$0xff]  ;;  %s709_s29 = sshll.u32 %s351_s17, 4  ;;  %s707_s12 = scalar_lea.hbm %s1588_s7, %s838_s11  ;;  %s710_s29 = int_to_ptr.vmem [resolvable:$true] %s709_s29 }
  0x76   : > { %882 = vmatpush3.msra.mxu0 %v357_v1  ;;  %889 = vmatpush3.msra.mxu1 %v354_v2  ;;  %v545_v8 = vld [vmem:[#allocation10 + $0x78] sm:$0xff]  ;;  %v544_v10 = vld [vmem:[#allocation10 + $0x70] sm:$0xff]  ;;  %v543_v12 = vld [vmem:[#allocation10 + $0x68] sm:$0xff]  ;;  %s696_s20 = scalar_lea.sflag [#allocation4], %s1476_s18  ;;  %s1188_s16 = scalar_lea.vmem %s710_s29, 128 }
  0x77   : > { %883 = vmatprep.subr.mxu0 %v1269_v0  ;;  %890 = vmatprep.subr.mxu1 %v1269_v0  ;;  %v525_v13 = vld [vmem:[#allocation8 + $0x60] sm:$0xff]  ;;  %v524_v15 = vld [vmem:[#allocation8 + $0x58] sm:$0xff]  ;;  %v523_v17 = vld [vmem:[#allocation8 + $0x50] sm:$0xff]  ;;  %p1189_p8 = scmp.ne.s32.totalorder %s710_s29, %s1188_s16  ;;  %p1610_p7 = scmp.ne.s32.totalorder %s1601_s21, 0 }
  0x78   : > { %884 = vmatpush3.msra.mxu0 %v356_v3  ;;  %891 = vmatpush3.msra.mxu1 %v353_v4  ;;  %v542_v14 = vld [vmem:[#allocation10 + $0x60] sm:$0xff]  ;;  %v541_v16 = vld [vmem:[#allocation10 + $0x58] sm:$0xff]  ;;  %v540_v18 = vld [vmem:[#allocation10 + $0x50] sm:$0xff]  ;;  %s1271_s1 = smov [#allocation11]  }
  0x79   : > { %886 = vmatmul.mubr.msk.f32.vlgmr.msra.gmra.mxu0 %vm358_vm1, %v355_v6  ;;  %893 = vmatmul.mubr.msk.f32.vlgmr.msra.gmra.mxu1 %vm358_vm1, %v352_v5  ;;  %v522_v19 = vld [vmem:[#allocation8 + $0x48] sm:$0xff]  ;;  %v521_v21 = vld [vmem:[#allocation8 + $0x40] sm:$0xff]  ;;  %v520_v23 = vld [vmem:[#allocation8 + $0x38] sm:$0xff]  ;;  %p1190_p10 = pnand %p1189_p8, %p1610_p7  ;;  %s1192_s30 = sshll.u32 %s1271_s1, 4  ;;  %s1193_s30 = int_to_ptr.vmem [resolvable:$false] %s1192_s30 }
  0x7a   : > { %930 = vmatprep.subr.mxu1 %v1269_v0  ;;  %895 = vmatprep.subr.mxu0 %v1269_v0  ;;  %v539_v20 = vld [vmem:[#allocation10 + $0x48] sm:$0xff]  ;;  %v538_v22 = vld [vmem:[#allocation10 + $0x40] sm:$0xff]  ;;  %v537_v24 = vld [vmem:[#allocation10 + $0x38] sm:$0xff]  ;;  %s1194_s28 = scalar_lea.vmem %s1193_s30, 256  ;;  %p1195_p12 = scmp.lt.s32.totalorder %s710_s29, %s1193_s30 }
  0x7b   : > { %931 = vmatpush3.msra.mxu1 %v528_v7  ;;  %896 = vmatpush3.msra.mxu0 %v545_v8  ;;  %v519_v25 = vld [vmem:[#allocation8 + $0x30] sm:$0xff]  ;;  %v518_v27 = vld [vmem:[#allocation8 + $0x28] sm:$0xff]  ;;  %v517_v29 = vld [vmem:[#allocation8 + $0x20] sm:$0xff]  ;;  %p1191_p0 = pneg %p1190_p10  ;;  %p1196_p2 = scmp.lt.s32.totalorder %s1194_s28, %s1188_s16 }
  0x7c   : > { %932 = vmatprep.subr.mxu1 %v1269_v0  ;;  %897 = vmatprep.subr.mxu0 %v1269_v0  ;;  %v536_v26 = vld [vmem:[#allocation10 + $0x30] sm:$0xff]  ;;  %v535_v28 = vld [vmem:[#allocation10 + $0x28] sm:$0xff]  ;;  %v534_v30 = vld [vmem:[#allocation10 + $0x20] sm:$0xff] }
  0x7d   : > { %933 = vmatpush3.msra.mxu1 %v527_v9  ;;  %898 = vmatpush3.msra.mxu0 %v544_v10  ;;  %v516_v31 = vld [vmem:[#allocation8 + $0x18] sm:$0xff]  ;;  %v515_v33 = vld [vmem:[#allocation8 + $0x10] sm:$0xff]  ;;  %v514_v35 = vld [vmem:[#allocation8 + $0x8] sm:$0xff]  ;;  %p1197_p9 = por %p1196_p2, %p1195_p12 }
  0x7e   : > { %934 = vmatprep.subr.mxu1 %v1269_v0  ;;  %899 = vmatprep.subr.mxu0 %v1269_v0  ;;  %v533_v32 = vld [vmem:[#allocation10 + $0x18] sm:$0xff]  ;;  %v532_v34 = vld [vmem:[#allocation10 + $0x10] sm:$0xff]  ;;  %v531_v36 = vld [vmem:[#allocation10 + $0x8] sm:$0xff] }
  0x7f   : > { %935 = vmatpush3.msra.mxu1 %v526_v11  ;;  %900 = vmatpush3.msra.mxu0 %v543_v12  ;;  %v513_v37 = vld [vmem:[#allocation8] sm:$0xff]  ;;  %v835_v41 = vld [vmem:[%s1584_s3] ss:$0 sm:$0xff]  ;;  %p1198_p11 = pnand %p1197_p9, %p1191_p0 }
  0x80   : > { %936 = vmatprep.subr.mxu1 %v1269_v0  ;;  %901 = vmatprep.subr.mxu0 %v1269_v0  ;;  %v530_v38 = vld [vmem:[#allocation10] sm:$0xff]  ;;  %v836_v49 = vld [vmem:[%s1587_s6] ss:$0 sm:$0xff] }
  0x81   : > { %937 = vmatpush3.msra.mxu1 %v525_v13  ;;  %902 = vmatpush3.msra.mxu0 %v542_v14 }
  0x82   : > { %938 = vmatprep.subr.mxu1 %v1269_v0  ;;  %903 = vmatprep.subr.mxu0 %v1269_v0 }
  0x83   : > { %939 = vmatpush3.msra.mxu1 %v524_v15  ;;  %904 = vmatpush3.msra.mxu0 %v541_v16 }
  0x84   : > { %940 = vmatprep.subr.mxu1 %v1269_v0  ;;  %905 = vmatprep.subr.mxu0 %v1269_v0 }
  0x85   : > { %941 = vmatpush3.msra.mxu1 %v523_v17  ;;  %906 = vmatpush3.msra.mxu0 %v540_v18 }
  0x86   : > { %942 = vmatprep.subr.mxu1 %v1269_v0  ;;  %907 = vmatprep.subr.mxu0 %v1269_v0 }
  0x87   : > { %943 = vmatpush3.msra.mxu1 %v522_v19  ;;  %908 = vmatpush3.msra.mxu0 %v539_v20 }
  0x88   : > { %944 = vmatprep.subr.mxu1 %v1269_v0  ;;  %909 = vmatprep.subr.mxu0 %v1269_v0 }
  0x89   : > { %945 = vmatpush3.msra.mxu1 %v521_v21  ;;  %910 = vmatpush3.msra.mxu0 %v538_v22 }
  0x8a   : > { %946 = vmatprep.subr.mxu1 %v1269_v0  ;;  %911 = vmatprep.subr.mxu0 %v1269_v0 }
  0x8b   : > { %947 = vmatpush3.msra.mxu1 %v520_v23  ;;  %912 = vmatpush3.msra.mxu0 %v537_v24 }
  0x8c   : > { %948 = vmatprep.subr.mxu1 %v1269_v0  ;;  %913 = vmatprep.subr.mxu0 %v1269_v0 }
  0x8d   : > { %949 = vmatpush3.msra.mxu1 %v519_v25  ;;  %914 = vmatpush3.msra.mxu0 %v536_v26 }
  0x8e   : > { %950 = vmatprep.subr.mxu1 %v1269_v0  ;;  %915 = vmatprep.subr.mxu0 %v1269_v0 }
  0x8f   : > { %951 = vmatpush3.msra.mxu1 %v518_v27  ;;  %916 = vmatpush3.msra.mxu0 %v535_v28 }
  0x90   : > { %952 = vmatprep.subr.mxu1 %v1269_v0  ;;  %917 = vmatprep.subr.mxu0 %v1269_v0 }
  0x91   : > { %953 = vmatpush3.msra.mxu1 %v517_v29  ;;  %918 = vmatpush3.msra.mxu0 %v534_v30 }
  0x92   : > { %954 = vmatprep.subr.mxu1 %v1269_v0  ;;  %919 = vmatprep.subr.mxu0 %v1269_v0 }
  0x93   : > { %955 = vmatpush3.msra.mxu1 %v516_v31  ;;  %962 = vmatprep.mubr.msk.f32.mxu1 %vm1270_vm0, %v1269_v0 }
  0x94   : > { %956 = vmatprep.subr.mxu1 %v1269_v0  ;;  %927 = vmatprep.mubr.msk.f32.mxu0 %vm1270_vm0, %v1269_v0 }
  0x95   : > { %920 = vmatpush3.msra.mxu0 %v533_v32  ;;  %957 = vmatpush3.msra.mxu1 %v515_v33 }
  0x96   : > { %921 = vmatprep.subr.mxu0 %v1269_v0  ;;  %958 = vmatprep.subr.mxu1 %v1269_v0 }
  0x97   : > { %922 = vmatpush3.msra.mxu0 %v532_v34  ;;  %959 = vmatpush3.msra.mxu1 %v514_v35 }
  0x98   : > { %923 = vmatprep.subr.mxu0 %v1269_v0  ;;  %960 = vmatprep.subr.mxu1 %v1269_v0 }
  0x99   : > { %924 = vmatpush3.msra.mxu0 %v531_v36  ;;  %961 = vmatpush3.msra.mxu1 %v513_v37 }
  0x9a   : > { %925 = vmatprep.subr.mxu0 %v1269_v0 }
  0x9b   : > { %926 = vmatpush3.msra.mxu0 %v530_v38 }
 0x139   : > { %v428_v39 = vpop.f32.mrf.mxu0  ;;  %v501_v40 = vpop.f32.mrf.mxu1 }
 0x13a   : > { %v502_v42 = vadd.f32 %v501_v40, %v428_v39 }
 0x13b   : > { %v887_v43 = vpop.f32.mrf.mxu0  ;;  %v894_v44 = vpop.f32.mrf.mxu1 }
 0x13c   : > { %v512_v45 = vadd.f32 %v835_v41, %v502_v42 }
 0x13e   : > { %v529_v46 = vmul.f32 %v512_v45, %v512_v45  ;;  %963 = vmatmul.mubr.f32.vlgmr.msra.gmra.mxu1 %v512_v45 }
 0x140   : > { %928 = vmatmul.mubr.f32.vlgmr.msra.gmra.mxu0 %v529_v46 }
 0x1fe   : > { %v682_v47 = vpop.f32.mrf.mxu1 }
 0x200   : > { %v612_v48 = vpop.f32.mrf.mxu0  ;;  %v964_v50 = vpop.f32.mrf.mxu1 }
 0x201   : > { %v683_v51 = vadd.f32 %v682_v47, %v612_v48 }
 0x202   : > { %v929_v52 = vpop.f32.mrf.mxu0 }
 0x203   : > { %v693_v53 = vadd.f32 %v836_v49, %v683_v51 }
 0x205   : > { %694 = vst [vmem:[%s351_s17] sm:$0xff] %v693_v53 }
 0x206   : > { %1201 = shalt.err (!%p1198_p11)
}
 0x207   : > { %s1202_s2 = scalar_lea.hbm %s707_s12, 128  ;;  %s1206_s15 = scalar_lea.hbm %s1588_s7, 256 }
 0x208   : > { %p1203_p13 = scmp.ne.s32.totalorder %s707_s12, %s1202_s2  ;;  %p1207_p4 = scmp.lt.s32.totalorder %s707_s12, %s1588_s7 }
 0x209   : > { %p1208_p6 = scmp.lt.s32.totalorder %s1206_s15, %s1202_s2 }
 0x20a   : > { %p1204_p1 = pnand %p1203_p13, %p1610_p7 }
 0x20b   : > { %p1209_p5 = por %p1208_p6, %p1207_p4 }
 0x20c   : > { %p1205_p3 = pneg %p1204_p1 }
 0x20e   : > { %p1210_p8 = pnand %p1209_p5, %p1205_p3 }
 0x210   : > { %1213 = shalt.err (!%p1210_p8)
}
 0x211   : > { %983 = dma.vmem_to_hbm [thread:$0]  (%p1610_p7), %s710_s29, 128, %s707_s12, %s696_s20  }
 0x212 PF: > { %s721_s11 = sand.u32 1, %s1248_s24   ;;  %p1611_p10 = scmp.ne.s32.totalorder %s1602_s22, 0 }
 0x213   : > { %p1612_p0 = scmp.ge.s32.totalorder %s1260_s27, 2  ;;  %s722_s17 = scalar_lea.sflag [#allocation4], %s721_s11 }
 0x215   : > { %p1003_p12 = pnand %p1612_p0, %p1611_p10 }
 0x217   : > { %p1004_p2 = pneg %p1003_p12 }
 0x219   : > { %1243 = dma.done.wait (%p1004_p2), %s722_s17, 128  }
 0x21a   : > { %1245 = vsyncadd (%p1004_p2), %s722_s17, 4294967168  ;;  %p22_p9 = scmp.ge.s32.totalorder %s1413_s14, 4   ;;  %s1613_s24 = smov %s1252_s25 }
 0x21b   : > { %s1614_s25 = smov %s1256_s26  ;;  %s1615_s26 = smov %s1424_s19 }
 0x21c   : > { %s1616_s27 = smov %s1413_s14  ;;  %24 = sbr.rel (!%p22_p9) target bundleno = 10 (0xa), region = 109 }
 0x221   :  { %727 = vsyncpa [#allocation3], 1 }
 0x222   :  { %729 = vsyncpa [#allocation3 + $0x1], 1 }
 0x223   :  { %730 = vsyncpa [#allocation6], 1 }
 0x224   :  { %731 = vsyncpa [#allocation9], 1 }
 0x225   :  { %732 = vsyncpa [#allocation4], 1 }
 0x226   :  { %734 = vsyncpa [#allocation4 + $0x1], 1 }

// kernel: tpu_custom_call.1
= control target key start
LH: loop header
LB: loop body
LE: loop exit
PB: predicated region body
PF: predicated region fallthrough
CT: control target
= control target key end

     0   :  { %s1581_s0 = inlined_call_operand.hbm [shape: f32[16,16], index: 0, kind: input, shape index: {}]   ;;  %s1582_s1 = inlined_call_operand.hbm [shape: f32[16,128], index: 1, kind: input, shape index: {}]   ;;  %s1583_s2 = inlined_call_operand.hbm [shape: f32[16,128], index: 2, kind: input, shape index: {}]   ;;  %s1584_s3 = inlined_call_operand.vmem [shape: f32[1,128], index: 3, kind: input, shape index: {}]   ;;  %s1585_s4 = inlined_call_operand.hbm [shape: f32[128,128], index: 4, kind: input, shape index: {}]   ;;  %s1586_s5 = inlined_call_operand.hbm [shape: f32[128,128], index: 5, kind: input, shape index: {}]   ;;  %s1587_s6 = inlined_call_operand.vmem [shape: f32[1,128], index: 6, kind: input, shape index: {}]   ;;  %s1588_s7 = inlined_call_operand.hbm [shape: f32[16,128], index: 7, kind: output, shape index: {}]  }
   0x1   :  { %1593 = sst [smem:[#allocation16_spill]] %s1582_s1 }
   0x2   :  { %1594 = sst [smem:[#allocation17_spill]] %s1583_s2 }
   0x3   :  { %12 = vsyncpa [#allocation3], 0 }
   0x4   :  { %14 = vsyncpa [#allocation3 + $0x1], 0 }
   0x5   :  { %15 = vsyncpa [#allocation6], 0 }
   0x6   :  { %16 = vsyncpa [#allocation9], 0 }
   0x7   :  { %17 = vsyncpa [#allocation4], 0 }
   0x8   :  { %19 = vsyncpa [#allocation4 + $0x1], 0  ;;  %s1312_s24 = smov 0   ;;  %s1314_s25 = smov 0  }
   0x9   :  { %s1316_s26 = smov 0   ;;  %s1318_s27 = smov 0  }
   0xa LB: > { %s1262_s28 = smov [#allocation5]   ;;  %s1333_s30 = sadd.s32 4294967295, %s1260_s27   ;;  %s1260_s27 = sphi %s1318_s27, %s1616_s27   ;;  %s1256_s26 = sphi %s1316_s26, %s1615_s26   ;;  %s1252_s25 = sphi %s1314_s25, %s1614_s25   ;;  %s1248_s24 = sphi %s1312_s24, %s1613_s24  }
   0xb   : > { %s220_s29 = sshll.u32 %s1262_s28, 4  ;;  %p818_p0 = scmp.ge.s32.totalorder %s1260_s27, 1  ;;  %s221_s29 = int_to_ptr.vmem [resolvable:$true] %s220_s29 }
   0xc   : > { %p1589_p1 = scmp.eq.s32.totalorder %s1333_s30, 0  ;;  %p208_p2 = scmp.lt.s32.totalorder %s1260_s27, 3 }
   0xd   : > { %s1263_s9 = smov [#allocation8]   ;;  %s1264_s12 = smov [#allocation7]  }
   0xe   : > { %p1338_p3 = pnand %p818_p0, %p208_p2  ;;  %s249_s10 = sshll.u32 %s1263_s9, 4  ;;  %s1351_s10 = int_to_ptr.vmem [resolvable:$true] %s249_s10 }
   0xf   : > { %s233_s13 = sshll.u32 %s1264_s12, 4  ;;  %s1067_s14 = scalar_lea.vmem %s221_s29, 256  ;;  %s1353_s13 = int_to_ptr.vmem [resolvable:$true] %s233_s13 }
  0x10   : > { %s1595_s8 = scalar_select %p1338_p3, 1, 0 }
  0x11   : > { %p985_p5 = pneg %p1338_p3  ;;  %p1068_p8 = scmp.ne.s32.totalorder %s221_s29, %s1067_s14 }
  0x12   : > { %p1075_p11 = scmp.lt.s32.totalorder %s221_s29, %s221_s29  ;;  %p1076_p12 = scmp.lt.s32.totalorder %s1067_s14, %s1067_s14 }
  0x13   : > { %p1347_p6 = pnand %p985_p5, %p1589_p1 }
  0x14   : > { %p1077_p13 = por %p1076_p12, %p1075_p11 }
  0x15   : > { %p1058_p7 = pneg %p1347_p6 }
  0x17   : > { %p1070_p9 = pnand %p1068_p8, %p1058_p7 }
  0x19   : > { %p1071_p10 = pneg %p1070_p9 }
  0x1b   : > { %p1078_p0 = pnand %p1077_p13, %p1071_p10 }
  0x1d   : > { %1081 = shalt.err (!%p1078_p0)
}
  0x1e   : > { %s1265_s15 = smov 128   ;;  %s1266_s16 = smov 8  }
  0x1f   : > { %s1597_s1 = sld [smem:[#allocation16_spill]]  ;;  %s1093_s19 = scalar_lea.vmem %s1351_s10, 2048 }
  0x20   : > { %p1094_p2 = scmp.ne.s32.totalorder %s1351_s10, %s1093_s19  ;;  %p1101_p9 = scmp.lt.s32.totalorder %s1351_s10, %s1351_s10 }
  0x21   : > { %p1102_p10 = scmp.lt.s32.totalorder %s1093_s19, %s1093_s19 }
  0x22   : > { %p1096_p5 = pnand %p1094_p2, %p1058_p7 }
  0x23   : > { %p1103_p11 = por %p1102_p10, %p1101_p9 }
  0x24   : > { %p1097_p8 = pneg %p1096_p5 }
  0x25   : > { %988 = dma.hbm_to_vmem [thread:$0]  (!%p1347_p6), %s1597_s1, 256, %s221_s29, [#allocation6], %s1265_s15, %s1265_s15, %s1266_s16  }
  0x26   : > { %p1104_p12 = pnand %p1103_p11, %p1097_p8 }
  0x28   : > { %1107 = shalt.err (!%p1104_p12)
}
  0x29   : > { %994 = dma.hbm_to_vmem [thread:$0]  (!%p1347_p6), %s1585_s4, 2048, %s1351_s10, [#allocation9], %s1265_s15, %s1265_s15, %s1266_s16  }
  0x2a   : > { %s1119_s22 = scalar_lea.vmem %s1353_s13, 256  ;;  %p1127_p5 = scmp.lt.s32.totalorder %s1353_s13, %s1353_s13 }
  0x2b   : > { %p1120_p13 = scmp.ne.s32.totalorder %s1353_s13, %s1119_s22  ;;  %p1128_p8 = scmp.lt.s32.totalorder %s1119_s22, %s1119_s22 }
  0x2d   : > { %p1122_p0 = pnand %p1120_p13, %p1058_p7  ;;  %p1129_p9 = por %p1128_p8, %p1127_p5 }
  0x2f   : > { %p1123_p2 = pneg %p1122_p0 }
  0x31   : > { %p1130_p10 = pnand %p1129_p9, %p1123_p2 }
  0x33   : > { %1133 = shalt.err (!%p1130_p10)
}
  0x34   : > { %s1598_s2 = sld [smem:[#allocation17_spill]]  ;;  %s1267_s29 = smov [#allocation10]  }
  0x35   : > { %s262_s9 = sshll.u32 %s1267_s29, 4  ;;  %s263_s9 = int_to_ptr.vmem [resolvable:$true] %s262_s9 }
  0x36   : > { %s1145_s10 = scalar_lea.vmem %s263_s9, 2048  ;;  %p1153_p0 = scmp.lt.s32.totalorder %s263_s9, %s263_s9 }
  0x37   : > { %p1146_p11 = scmp.ne.s32.totalorder %s263_s9, %s1145_s10  ;;  %p1154_p2 = scmp.lt.s32.totalorder %s1145_s10, %s1145_s10 }
  0x39   : > { %p1148_p12 = pnand %p1146_p11, %p1058_p7  ;;  %p1155_p5 = por %p1154_p2, %p1153_p0 }
  0x3a   : > { %991 = dma.hbm_to_vmem [thread:$0]  (!%p1347_p6), %s1598_s2, 256, %s1353_s13, [#allocation6], %s1265_s15, %s1265_s15, %s1266_s16  }
  0x3b   : > { %p1149_p13 = pneg %p1148_p12 }
  0x3d   : > { %p1156_p8 = pnand %p1155_p5, %p1149_p13 }
  0x3f   : > { %1159 = shalt.err (!%p1156_p8)
}
  0x40   : > { %997 = dma.hbm_to_vmem [thread:$0]  (!%p1347_p6), %s1586_s5, 2048, %s263_s9, [#allocation9], %s1265_s15, %s1265_s15, %s1266_s16  }
  0x41   : > { %s817_s11 = sadd.s32 4294967294, %s1260_s27   ;;  %s1413_s14 = sadd.s32 1, %s1260_s27  }
  0x42   : > { %s29_s17 = ssub.s32 %s1260_s27, %s1413_s14  ;;  %s32_s18 = sadd.s32 1, %s1256_s26 }
  0x43   : > { %p30_p7 = scmp.eq.s32.totalorder %s29_s17, 0  ;;  %p39_p9 = scmp.ne.s32.totalorder %s1256_s26, %s1252_s25 }
  0x44   : > { %p40_p10 = scmp.eq.s32.totalorder %s1260_s27, 0  ;;  %p45_p11 = scmp.ne.s32.totalorder %s1252_s25, %s1248_s24 }
  0x45   : > { %s1424_s19 = scalar_select %p30_p7, %s1256_s26, %s32_s18  }
  0x46   : > { %p1426_p12 = por %p40_p10, %p39_p9  ;;  %p1432_p6 = por %p1589_p1, %p45_p11 }
  0x47   : > { %p195_p13 = scmp.eq.s32.totalorder %s1333_s30, 1  ;;  %p201_p0 = scmp.eq.s32.totalorder %s817_s11, 1 }
  0x48   : > { %s1600_s15 = scalar_select %p1432_p6, 1, 0 }
  0x49   : > { %p1010_p2 = scmp.lt.s32.totalorder %s1260_s27, 2  ;;  %s279_s16 = sand.u32 1, %s1256_s26  }
  0x4a   : > { %p1439_p5 = por %p195_p13, %p39_p9  ;;  %p1443_p8 = por %p201_p0, %p45_p11 }
  0x4b   : > { %s824_s23 = sshll.u32 %s279_s16, 3  ;;  %s825_s28 = sshll.u32 %s1260_s27, 7 }
  0x4c   : > { %s1601_s21 = scalar_select %p1439_p5, 1, 0 }
  0x4d   : > { %s1602_s22 = scalar_select %p1443_p8, 1, 0 }
  0x4e   : > { %s1451_s10 = scalar_lea.hbm %s1581_s0, %s825_s28  ;;  %s283_s12 = scalar_lea.vmem [#allocation2], %s824_s23 }
  0x4f   : > { %s290_s13 = sshll.u32 %s283_s12, 4  ;;  %p1455_p7 = pnand %p1010_p2, %p1426_p12  ;;  %s291_s13 = int_to_ptr.vmem [resolvable:$true] %s290_s13 }
  0x50   : > { %s280_s17 = scalar_lea.sflag [#allocation3], %s279_s16  ;;  %s1160_s18 = scalar_lea.hbm %s1451_s10, 128 }
  0x51   : > { %p1161_p9 = scmp.ne.s32.totalorder %s1451_s10, %s1160_s18  ;;  %p1162_p10 = pneg %p1455_p7 }
  0x52   : > { %s1165_s9 = scalar_lea.hbm %s1581_s0, 256  ;;  %p1166_p0 = scmp.lt.s32.totalorder %s1451_s10, %s1581_s0 }
  0x53   : > { %p1163_p11 = pnand %p1162_p10, %p1161_p9  ;;  %p1167_p12 = scmp.lt.s32.totalorder %s1165_s9, %s1160_s18 }
  0x55   : > { %p1164_p13 = pneg %p1163_p11  ;;  %p1168_p2 = por %p1167_p12, %p1166_p0 }
  0x57   : > { %p1169_p4 = pnand %p1168_p2, %p1164_p13 }
  0x59   : > { %1172 = shalt.err (!%p1169_p4)
}
  0x5a   : > { %s1173_s20 = scalar_lea.vmem %s291_s13, 128  ;;  %s1268_s16 = smov [#allocation2]  }
  0x5b   : > { %p1174_p1 = scmp.ne.s32.totalorder %s291_s13, %s1173_s20  ;;  %s1178_s1 = sshll.u32 %s1268_s16, 4  ;;  %s1179_s1 = int_to_ptr.vmem [resolvable:$false] %s1178_s1 }
  0x5c   : > { %s1180_s2 = scalar_lea.vmem %s1179_s1, 256  ;;  %p1181_p9 = scmp.lt.s32.totalorder %s291_s13, %s1179_s1 }
  0x5d   : > { %p1176_p8 = pnand %p1174_p1, %p1162_p10  ;;  %p1182_p11 = scmp.lt.s32.totalorder %s1180_s2, %s1173_s20 }
  0x5f   : > { %p1177_p5 = pneg %p1176_p8  ;;  %p1183_p6 = por %p1182_p11, %p1181_p9 }
  0x61   : > { %p1184_p3 = pnand %p1183_p6, %p1177_p5 }
  0x63   : > { %1187 = shalt.err (!%p1184_p3)
}
  0x64   : > { %1001 = dma.hbm_to_vmem [thread:$0]  (!%p1455_p7), %s1451_s10, 128, %s291_s13, %s280_s17  }
  0x65   : > { %p1604_p13 = scmp.ne.s32.totalorder %s1595_s8, 0 }
  0x66   : > { %s1476_s18 = sand.u32 (!%p1604_p13), 1, %s1252_s25   ;;  %p1605_p1 = scmp.ne.s32.totalorder (!%p1604_p13), %s1600_s15, 0 }
  0x67   : > { %299 = sbr.rel (%p1604_p13) target bundleno = 530 (0x212), region = 48  ;;  %s827_s28 = sshll.u32 (!%p1604_p13), %s1476_s18, 3 }
  0x68   : > { %s302_s1 = scalar_lea.sflag (!%p1604_p13), [#allocation3], %s1476_s18  ;;  %s305_s2 = scalar_lea.vmem (!%p1604_p13), [#allocation2], %s827_s28 }
  0x6c   : > { %1231 = dma.done.wait (%p1605_p1), %s302_s1, 128  }
  0x6d   : > { %1233 = vsyncadd (%p1605_p1), %s302_s1, 4294967168  ;;  %p1606_p3 = scmp.eq.s32.totalorder %s1333_s30, 0 }
  0x6f   : > { %1235 = dma.done.wait (%p1606_p3), [#allocation6], 512   ;;  %p1607_p4 = pmov %p1606_p3 }
  0x70   : > { %p1608_p6 = pmov %p1606_p3 }
  0x71   : > { %1237 = vsyncadd (%p1607_p4), [#allocation6], 4294966784 }
  0x72   : > { %1239 = dma.done.wait (%p1608_p6), [#allocation9], 4096   ;;  %p1609_p5 = pmov %p1606_p3 }
  0x73   : > { %v1269_v0 = vmov 0.0   ;;  %vm1270_vm0 = vmmov 0   ;;  %v357_v1 = vld [vmem:[#allocation7 + $0x8] sm:$0xff]  ;;  %v354_v2 = vld [vmem:[#allocation5 + $0x8] sm:$0xff]  ;;  %v356_v3 = vld [vmem:[#allocation7] sm:$0xff]  ;;  %vm358_vm1 = vcmask 130048  }
  0x74   : > { %1241 = vsyncadd (%p1609_p5), [#allocation9], 4294963200  ;;  %881 = vmatprep.subr.mxu0 %v1269_v0  ;;  %888 = vmatprep.subr.mxu1 %v1269_v0  ;;  %v353_v4 = vld [vmem:[#allocation5] sm:$0xff]  ;;  %v352_v5 = vld [vmem:[%s305_s2] sm:$0xff]  ;;  %s838_s11 = sshll.u32 %s1333_s30, 7  ;;  %s351_s17 = scalar_lea.vmem [#allocation11], %s827_s28 }
  0x75   : > { %885 = vmatprep.mubr.msk.f32.mxu0 %vm1270_vm0, %v1269_v0  ;;  %892 = vmatprep.mubr.msk.f32.mxu1 %vm1270_vm0, %v1269_v0  ;;  %v355_v6 = vmul.f32 %v352_v5, %v352_v5  ;;  %v528_v7 = vld [vmem:[#allocation8 + $0x78] sm:$0xff]  ;;  %v527_v9 = vld [vmem:[#allocation8 + $0x70] sm:$0xff]  ;;  %v526_v11 = vld [vmem:[#allocation8 + $0x68] sm:$0xff]  ;;  %s709_s29 = sshll.u32 %s351_s17, 4  ;;  %s707_s12 = scalar_lea.hbm %s1588_s7, %s838_s11  ;;  %s710_s29 = int_to_ptr.vmem [resolvable:$true] %s709_s29 }
  0x76   : > { %882 = vmatpush3.msra.mxu0 %v357_v1  ;;  %889 = vmatpush3.msra.mxu1 %v354_v2  ;;  %v545_v8 = vld [vmem:[#allocation10 + $0x78] sm:$0xff]  ;;  %v544_v10 = vld [vmem:[#allocation10 + $0x70] sm:$0xff]  ;;  %v543_v12 = vld [vmem:[#allocation10 + $0x68] sm:$0xff]  ;;  %s696_s20 = scalar_lea.sflag [#allocation4], %s1476_s18  ;;  %s1188_s16 = scalar_lea.vmem %s710_s29, 128 }
  0x77   : > { %883 = vmatprep.subr.mxu0 %v1269_v0  ;;  %890 = vmatprep.subr.mxu1 %v1269_v0  ;;  %v525_v13 = vld [vmem:[#allocation8 + $0x60] sm:$0xff]  ;;  %v524_v15 = vld [vmem:[#allocation8 + $0x58] sm:$0xff]  ;;  %v523_v17 = vld [vmem:[#allocation8 + $0x50] sm:$0xff]  ;;  %p1189_p8 = scmp.ne.s32.totalorder %s710_s29, %s1188_s16  ;;  %p1610_p7 = scmp.ne.s32.totalorder %s1601_s21, 0 }
  0x78   : > { %884 = vmatpush3.msra.mxu0 %v356_v3  ;;  %891 = vmatpush3.msra.mxu1 %v353_v4  ;;  %v542_v14 = vld [vmem:[#allocation10 + $0x60] sm:$0xff]  ;;  %v541_v16 = vld [vmem:[#allocation10 + $0x58] sm:$0xff]  ;;  %v540_v18 = vld [vmem:[#allocation10 + $0x50] sm:$0xff]  ;;  %s1271_s1 = smov [#allocation11]  }
  0x79   : > { %886 = vmatmul.mubr.msk.f32.vlgmr.msra.gmra.mxu0 %vm358_vm1, %v355_v6  ;;  %893 = vmatmul.mubr.msk.f32.vlgmr.msra.gmra.mxu1 %vm358_vm1, %v352_v5  ;;  %v522_v19 = vld [vmem:[#allocation8 + $0x48] sm:$0xff]  ;;  %v521_v21 = vld [vmem:[#allocation8 + $0x40] sm:$0xff]  ;;  %v520_v23 = vld [vmem:[#allocation8 + $0x38] sm:$0xff]  ;;  %p1190_p10 = pnand %p1189_p8, %p1610_p7  ;;  %s1192_s30 = sshll.u32 %s1271_s1, 4  ;;  %s1193_s30 = int_to_ptr.vmem [resolvable:$false] %s1192_s30 }
  0x7a   : > { %930 = vmatprep.subr.mxu1 %v1269_v0  ;;  %895 = vmatprep.subr.mxu0 %v1269_v0  ;;  %v539_v20 = vld [vmem:[#allocation10 + $0x48] sm:$0xff]  ;;  %v538_v22 = vld [vmem:[#allocation10 + $0x40] sm:$0xff]  ;;  %v537_v24 = vld [vmem:[#allocation10 + $0x38] sm:$0xff]  ;;  %s1194_s28 = scalar_lea.vmem %s1193_s30, 256  ;;  %p1195_p12 = scmp.lt.s32.totalorder %s710_s29, %s1193_s30 }
  0x7b   : > { %931 = vmatpush3.msra.mxu1 %v528_v7  ;;  %896 = vmatpush3.msra.mxu0 %v545_v8  ;;  %v519_v25 = vld [vmem:[#allocation8 + $0x30] sm:$0xff]  ;;  %v518_v27 = vld [vmem:[#allocation8 + $0x28] sm:$0xff]  ;;  %v517_v29 = vld [vmem:[#allocation8 + $0x20] sm:$0xff]  ;;  %p1191_p0 = pneg %p1190_p10  ;;  %p1196_p2 = scmp.lt.s32.totalorder %s1194_s28, %s1188_s16 }
  0x7c   : > { %932 = vmatprep.subr.mxu1 %v1269_v0  ;;  %897 = vmatprep.subr.mxu0 %v1269_v0  ;;  %v536_v26 = vld [vmem:[#allocation10 + $0x30] sm:$0xff]  ;;  %v535_v28 = vld [vmem:[#allocation10 + $0x28] sm:$0xff]  ;;  %v534_v30 = vld [vmem:[#allocation10 + $0x20] sm:$0xff] }
  0x7d   : > { %933 = vmatpush3.msra.mxu1 %v527_v9  ;;  %898 = vmatpush3.msra.mxu0 %v544_v10  ;;  %v516_v31 = vld [vmem:[#allocation8 + $0x18] sm:$0xff]  ;;  %v515_v33 = vld [vmem:[#allocation8 + $0x10] sm:$0xff]  ;;  %v514_v35 = vld [vmem:[#allocation8 + $0x8] sm:$0xff]  ;;  %p1197_p9 = por %p1196_p2, %p1195_p12 }
  0x7e   : > { %934 = vmatprep.subr.mxu1 %v1269_v0  ;;  %899 = vmatprep.subr.mxu0 %v1269_v0  ;;  %v533_v32 = vld [vmem:[#allocation10 + $0x18] sm:$0xff]  ;;  %v532_v34 = vld [vmem:[#allocation10 + $0x10] sm:$0xff]  ;;  %v531_v36 = vld [vmem:[#allocation10 + $0x8] sm:$0xff] }
  0x7f   : > { %935 = vmatpush3.msra.mxu1 %v526_v11  ;;  %900 = vmatpush3.msra.mxu0 %v543_v12  ;;  %v513_v37 = vld [vmem:[#allocation8] sm:$0xff]  ;;  %v835_v41 = vld [vmem:[%s1584_s3] ss:$0 sm:$0xff]  ;;  %p1198_p11 = pnand %p1197_p9, %p1191_p0 }
  0x80   : > { %936 = vmatprep.subr.mxu1 %v1269_v0  ;;  %901 = vmatprep.subr.mxu0 %v1269_v0  ;;  %v530_v38 = vld [vmem:[#allocation10] sm:$0xff]  ;;  %v836_v49 = vld [vmem:[%s1587_s6] ss:$0 sm:$0xff] }
  0x81   : > { %937 = vmatpush3.msra.mxu1 %v525_v13  ;;  %902 = vmatpush3.msra.mxu0 %v542_v14 }
  0x82   : > { %938 = vmatprep.subr.mxu1 %v1269_v0  ;;  %903 = vmatprep.subr.mxu0 %v1269_v0 }
  0x83   : > { %939 = vmatpush3.msra.mxu1 %v524_v15  ;;  %904 = vmatpush3.msra.mxu0 %v541_v16 }
  0x84   : > { %940 = vmatprep.subr.mxu1 %v1269_v0  ;;  %905 = vmatprep.subr.mxu0 %v1269_v0 }
  0x85   : > { %941 = vmatpush3.msra.mxu1 %v523_v17  ;;  %906 = vmatpush3.msra.mxu0 %v540_v18 }
  0x86   : > { %942 = vmatprep.subr.mxu1 %v1269_v0  ;;  %907 = vmatprep.subr.mxu0 %v1269_v0 }
  0x87   : > { %943 = vmatpush3.msra.mxu1 %v522_v19  ;;  %908 = vmatpush3.msra.mxu0 %v539_v20 }
  0x88   : > { %944 = vmatprep.subr.mxu1 %v1269_v0  ;;  %909 = vmatprep.subr.mxu0 %v1269_v0 }
  0x89   : > { %945 = vmatpush3.msra.mxu1 %v521_v21  ;;  %910 = vmatpush3.msra.mxu0 %v538_v22 }
  0x8a   : > { %946 = vmatprep.subr.mxu1 %v1269_v0  ;;  %911 = vmatprep.subr.mxu0 %v1269_v0 }
  0x8b   : > { %947 = vmatpush3.msra.mxu1 %v520_v23  ;;  %912 = vmatpush3.msra.mxu0 %v537_v24 }
  0x8c   : > { %948 = vmatprep.subr.mxu1 %v1269_v0  ;;  %913 = vmatprep.subr.mxu0 %v1269_v0 }
  0x8d   : > { %949 = vmatpush3.msra.mxu1 %v519_v25  ;;  %914 = vmatpush3.msra.mxu0 %v536_v26 }
  0x8e   : > { %950 = vmatprep.subr.mxu1 %v1269_v0  ;;  %915 = vmatprep.subr.mxu0 %v1269_v0 }
  0x8f   : > { %951 = vmatpush3.msra.mxu1 %v518_v27  ;;  %916 = vmatpush3.msra.mxu0 %v535_v28 }
  0x90   : > { %952 = vmatprep.subr.mxu1 %v1269_v0  ;;  %917 = vmatprep.subr.mxu0 %v1269_v0 }
  0x91   : > { %953 = vmatpush3.msra.mxu1 %v517_v29  ;;  %918 = vmatpush3.msra.mxu0 %v534_v30 }
  0x92   : > { %954 = vmatprep.subr.mxu1 %v1269_v0  ;;  %919 = vmatprep.subr.mxu0 %v1269_v0 }
  0x93   : > { %955 = vmatpush3.msra.mxu1 %v516_v31  ;;  %962 = vmatprep.mubr.msk.f32.mxu1 %vm1270_vm0, %v1269_v0 }
  0x94   : > { %956 = vmatprep.subr.mxu1 %v1269_v0  ;;  %927 = vmatprep.mubr.msk.f32.mxu0 %vm1270_vm0, %v1269_v0 }
  0x95   : > { %920 = vmatpush3.msra.mxu0 %v533_v32  ;;  %957 = vmatpush3.msra.mxu1 %v515_v33 }
  0x96   : > { %921 = vmatprep.subr.mxu0 %v1269_v0  ;;  %958 = vmatprep.subr.mxu1 %v1269_v0 }
  0x97   : > { %922 = vmatpush3.msra.mxu0 %v532_v34  ;;  %959 = vmatpush3.msra.mxu1 %v514_v35 }
  0x98   : > { %923 = vmatprep.subr.mxu0 %v1269_v0  ;;  %960 = vmatprep.subr.mxu1 %v1269_v0 }
  0x99   : > { %924 = vmatpush3.msra.mxu0 %v531_v36  ;;  %961 = vmatpush3.msra.mxu1 %v513_v37 }
  0x9a   : > { %925 = vmatprep.subr.mxu0 %v1269_v0 }
  0x9b   : > { %926 = vmatpush3.msra.mxu0 %v530_v38 }
 0x139   : > { %v428_v39 = vpop.f32.mrf.mxu0  ;;  %v501_v40 = vpop.f32.mrf.mxu1 }
 0x13a   : > { %v502_v42 = vadd.f32 %v501_v40, %v428_v39 }
 0x13b   : > { %v887_v43 = vpop.f32.mrf.mxu0  ;;  %v894_v44 = vpop.f32.mrf.mxu1 }
 0x13c   : > { %v512_v45 = vadd.f32 %v835_v41, %v502_v42 }
 0x13e   : > { %v529_v46 = vmul.f32 %v512_v45, %v512_v45  ;;  %963 = vmatmul.mubr.f32.vlgmr.msra.gmra.mxu1 %v512_v45 }
 0x140   : > { %928 = vmatmul.mubr.f32.vlgmr.msra.gmra.mxu0 %v529_v46 }
 0x1fe   : > { %v682_v47 = vpop.f32.mrf.mxu1 }
 0x200   : > { %v612_v48 = vpop.f32.mrf.mxu0  ;;  %v964_v50 = vpop.f32.mrf.mxu1 }
 0x201   : > { %v683_v51 = vadd.f32 %v682_v47, %v612_v48 }
 0x202   : > { %v929_v52 = vpop.f32.mrf.mxu0 }
 0x203   : > { %v693_v53 = vadd.f32 %v836_v49, %v683_v51 }
 0x205   : > { %694 = vst [vmem:[%s351_s17] sm:$0xff] %v693_v53 }
 0x206   : > { %1201 = shalt.err (!%p1198_p11)
}
 0x207   : > { %s1202_s2 = scalar_lea.hbm %s707_s12, 128  ;;  %s1206_s15 = scalar_lea.hbm %s1588_s7, 256 }
 0x208   : > { %p1203_p13 = scmp.ne.s32.totalorder %s707_s12, %s1202_s2  ;;  %p1207_p4 = scmp.lt.s32.totalorder %s707_s12, %s1588_s7 }
 0x209   : > { %p1208_p6 = scmp.lt.s32.totalorder %s1206_s15, %s1202_s2 }
 0x20a   : > { %p1204_p1 = pnand %p1203_p13, %p1610_p7 }
 0x20b   : > { %p1209_p5 = por %p1208_p6, %p1207_p4 }
 0x20c   : > { %p1205_p3 = pneg %p1204_p1 }
 0x20e   : > { %p1210_p8 = pnand %p1209_p5, %p1205_p3 }
 0x210   : > { %1213 = shalt.err (!%p1210_p8)
}
 0x211   : > { %983 = dma.vmem_to_hbm [thread:$0]  (%p1610_p7), %s710_s29, 128, %s707_s12, %s696_s20  }
 0x212 PF: > { %s721_s11 = sand.u32 1, %s1248_s24   ;;  %p1611_p10 = scmp.ne.s32.totalorder %s1602_s22, 0 }
 0x213   : > { %p1612_p0 = scmp.ge.s32.totalorder %s1260_s27, 2  ;;  %s722_s17 = scalar_lea.sflag [#allocation4], %s721_s11 }
 0x215   : > { %p1003_p12 = pnand %p1612_p0, %p1611_p10 }
 0x217   : > { %p1004_p2 = pneg %p1003_p12 }
 0x219   : > { %1243 = dma.done.wait (%p1004_p2), %s722_s17, 128  }
 0x21a   : > { %1245 = vsyncadd (%p1004_p2), %s722_s17, 4294967168  ;;  %p22_p9 = scmp.ge.s32.totalorder %s1413_s14, 4   ;;  %s1613_s24 = smov %s1252_s25 }
 0x21b   : > { %s1614_s25 = smov %s1256_s26  ;;  %s1615_s26 = smov %s1424_s19 }
 0x21c   : > { %s1616_s27 = smov %s1413_s14  ;;  %24 = sbr.rel (!%p22_p9) target bundleno = 10 (0xa), region = 109 }
 0x221   :  { %727 = vsyncpa [#allocation3], 1 }
 0x222   :  { %729 = vsyncpa [#allocation3 + $0x1], 1 }
 0x223   :  { %730 = vsyncpa [#allocation6], 1 }
 0x224   :  { %731 = vsyncpa [#allocation9], 1 }
 0x225   :  { %732 = vsyncpa [#allocation4], 1 }
 0x226   :  { %734 = vsyncpa [#allocation4 + $0x1], 1 }

</bundles_post_ra>
